<compile_context>
chip_gen: v5e
topology: v5e:2x2
jax: 0.10.0
libtpu: 0.0.40
codegen_flags: <defaults>
</compile_context>

<pallas_src>
import functools

import jax
import jax.numpy as jnp
from jax.experimental import pallas as pl
from jax.experimental.pallas import tpu as pltpu

LANE = 128


def cnn_classifier_kernel(xp_ref, wconv_ref, bconv_ref, wfc_ref, bfc_ref, out_ref):
    # xp_ref:    (L+2, B)  zero-padded signal, L on the sublane axis (shifts = sublane slices)
    # wconv_ref: (3, C)    conv taps, C lane-dense (padded to 128)
    # bconv_ref: (1, C)    conv bias
    # wfc_ref:   (C, OUT)  fc weight, 128-aligned contraction, OUT lane-dense (padded to 128)
    # bfc_ref:   (1, OUT)  fc bias
    # out_ref:   (B, OUT)  lane-dense output
    Lp2, B = xp_ref.shape
    L = Lp2 - 2
    C = wconv_ref.shape[1]

    # Hoisted loads: once per kernel invocation, not per unrolled batch row.
    w0 = wconv_ref[0:1, :]        # (1, C)
    w1 = wconv_ref[1:2, :]        # (1, C)
    w2 = wconv_ref[2:3, :]        # (1, C)
    b_conv = bconv_ref[...]       # (1, C)
    w_fc = wfc_ref[...]           # (C, OUT)
    b_fc = bfc_ref[...]           # (1, OUT)

    # B is small and static -> this Python loop is fully unrolled at trace time.
    act_rows = []
    for b in range(B):
        # ONE lane broadcast per batch element; the three conv windows are then cheap
        # sublane-offset slices of the same (L+2, C) slab (no per-tap re-broadcast).
        xb = jnp.broadcast_to(xp_ref[:, b:b + 1], (Lp2, C))            # (L+2, C)

        # Conv1d(1 -> C, k=3, p=1) pre-bias as 3 VPU FMAs on sublane-shifted windows.
        h = xb[0:L, :] * w0 + xb[1:L + 1, :] * w1 + xb[2:L + 2, :] * w2  # (L, C)

        # AdaptiveMaxPool1d(1): global max over L (sublane reduce). Bias + ReLU are
        # deferred past the pool (exact: relu(max_l(z) + b) == max_l(relu(z + b))).
        pooled = jnp.max(h, axis=0, keepdims=True)                      # (1, C)
        act_rows.append(jnp.maximum(pooled + b_conv, 0.0))              # (1, C)

    # Batched fc: ONE 128-aligned MXU dot + ONE full-block lane-dense store.
    act = jnp.concatenate(act_rows, axis=0)                             # (B, C)
    out_ref[...] = jnp.dot(act, w_fc, preferred_element_type=jnp.float32) + b_fc


def _round_up(n, m):
    return ((n + m - 1) // m) * m


def prepare_params(w_conv, b_conv, w_fc, b_fc):
    """One-time weight preprocessing (outside the per-call jitted path): pad channel and
    output dims to lane-dense multiples of 128. Zeros are exact: padded channels produce
    conv=0, relu(0+0)=0 and hit zero fc rows; padded fc columns produce zero outputs that
    are sliced off after the kernel."""
    K, C = w_conv.shape
    OUT = w_fc.shape[1]
    C_pad = _round_up(C, LANE)
    OUT_pad = _round_up(OUT, LANE)
    w_conv_p = jnp.zeros((K, C_pad), jnp.float32).at[:, :C].set(w_conv)
    b_conv_p = jnp.zeros((1, C_pad), jnp.float32).at[0, :C].set(b_conv)
    w_fc_p = jnp.zeros((C_pad, OUT_pad), jnp.float32).at[:C, :OUT].set(w_fc)
    b_fc_p = jnp.zeros((1, OUT_pad), jnp.float32).at[0, :OUT].set(b_fc)
    return w_conv_p, b_conv_p, w_fc_p, b_fc_p


@functools.partial(jax.jit, static_argnames=("out_dim",))
def cnn_classifier_forward(x, w_conv_p, b_conv_p, w_fc_p, b_fc_p, *, out_dim):
    """x: (B, L) f32 — mirrors the PyTorch forward where x.unsqueeze(1) -> (B, 1, L).
    Params must already be lane-padded via prepare_params(). Returns (B, out_dim)."""
    B, L = x.shape
    OUT_pad = w_fc_p.shape[1]

    # (L+2, B): conv padding=1 baked in; L sits on the sublane axis so the kernel's three
    # shifted windows are plain sublane-offset slices. allow_input_fusion lets XLA fold
    # this pad+transpose into the custom-call operand instead of a standalone prologue op.
    xp_t = jnp.pad(x, ((0, 0), (1, 1))).T

    out_full = pl.pallas_call(
        cnn_classifier_kernel,
        out_shape=jax.ShapeDtypeStruct((B, OUT_pad), jnp.float32),
        in_specs=[pl.BlockSpec(memory_space=pltpu.MemorySpace.VMEM)] * 5,
        out_specs=pl.BlockSpec(memory_space=pltpu.MemorySpace.VMEM),
        compiler_params=pltpu.CompilerParams(
            allow_input_fusion=[True, False, False, False, False]),
    )(xp_t, w_conv_p, b_conv_p, w_fc_p, b_fc_p)

    # Downstream code could consume the lane-dense (B, OUT_pad) slab directly; slice here
    # to match the PyTorch module's (B, out_dim) output.
    return out_full[:, :out_dim]


if __name__ == "__main__":
    B, L, C, OUT = 2, 16, 100, 10  # input_dim=16, output_dim=10

    key = jax.random.PRNGKey(0)
    kx, kw1, kb1, kw2, kb2 = jax.random.split(key, 5)

    x = jax.random.normal(kx, (B, L), dtype=jnp.float32)

    conv_bound = (1.0 / 3.0) ** 0.5                 # fan_in = in_ch * kernel = 3
    w_conv = jax.random.uniform(kw1, (3, C), jnp.float32, -conv_bound, conv_bound)
    b_conv = jax.random.uniform(kb1, (C,), jnp.float32, -conv_bound, conv_bound)

    fc_bound = (1.0 / C) ** 0.5                     # fan_in = 100
    w_fc = jax.random.uniform(kw2, (C, OUT), jnp.float32, -fc_bound, fc_bound)
    b_fc = jax.random.uniform(kb2, (OUT,), jnp.float32, -fc_bound, fc_bound)

    # One-time weight preprocessing (hoisted out of the per-call path).
    params_p = prepare_params(w_conv, b_conv, w_fc, b_fc)

    out = jax.block_until_ready(cnn_classifier_forward(x, *params_p, out_dim=OUT))

    # Pure-JAX reference of the same forward pass (conv -> bias -> relu -> maxpool -> fc).
    xp = jnp.pad(x, ((0, 0), (1, 1)))
    patches = jnp.stack([xp[:, 0:L], xp[:, 1:L + 1], xp[:, 2:L + 2]], axis=-1)
    h = jnp.einsum("blk,kc->blc", patches, w_conv) + b_conv
    h = jnp.maximum(h, 0.0)
    pooled = jnp.max(h, axis=1)
    ref = pooled @ w_fc + b_fc

    assert out.shape == (B, OUT)
    assert jnp.allclose(out, ref, atol=1e-4, rtol=1e-4)
    print("KERNEL_OK")
</pallas_src>

<mosaic_0001>
module attributes {stable_mosaic.version = 11 : i64} {
  func.func @cnn_classifier_kernel(%arg0: memref<18x2xf32, #tpu.memory_space<vmem>>, %arg1: memref<3x128xf32, #tpu.memory_space<vmem>>, %arg2: memref<1x128xf32, #tpu.memory_space<vmem>>, %arg3: memref<128x128xf32, #tpu.memory_space<vmem>>, %arg4: memref<1x128xf32, #tpu.memory_space<vmem>>, %arg5: memref<2x128xf32, #tpu.memory_space<vmem>>) attributes {dimension_semantics = [], scalar_prefetch = 0 : i64, scratch_operands = 0 : i64, tpu.core_type = #tpu.core_type<tc>} {
    %c0 = arith.constant 0 : index
    %c0_0 = arith.constant 0 : index
    %0 = vector.load %arg1[%c0, %c0_0] : memref<3x128xf32, #tpu.memory_space<vmem>>, vector<1x128xf32>
    %c1 = arith.constant 1 : index
    %c0_1 = arith.constant 0 : index
    %1 = vector.load %arg1[%c1, %c0_1] : memref<3x128xf32, #tpu.memory_space<vmem>>, vector<1x128xf32>
    %c2 = arith.constant 2 : index
    %c0_2 = arith.constant 0 : index
    %2 = vector.load %arg1[%c2, %c0_2] : memref<3x128xf32, #tpu.memory_space<vmem>>, vector<1x128xf32>
    %c0_3 = arith.constant 0 : index
    %c0_4 = arith.constant 0 : index
    %3 = vector.load %arg2[%c0_3, %c0_4] : memref<1x128xf32, #tpu.memory_space<vmem>>, vector<1x128xf32>
    %c0_5 = arith.constant 0 : index
    %c0_6 = arith.constant 0 : index
    %4 = vector.load %arg3[%c0_5, %c0_6] : memref<128x128xf32, #tpu.memory_space<vmem>>, vector<128x128xf32>
    %c0_7 = arith.constant 0 : index
    %c0_8 = arith.constant 0 : index
    %5 = vector.load %arg4[%c0_7, %c0_8] : memref<1x128xf32, #tpu.memory_space<vmem>>, vector<1x128xf32>
    %c0_9 = arith.constant 0 : index
    %c0_10 = arith.constant 0 : index
    %6 = vector.load %arg0[%c0_9, %c0_10] : memref<18x2xf32, #tpu.memory_space<vmem>>, vector<18x1xf32>
    %7 = vector.shape_cast %6 : vector<18x1xf32> to vector<18x1xf32>
    %8 = vector.broadcast %7 : vector<18x1xf32> to vector<18x128xf32>
    %9 = vector.extract_strided_slice %8 {offsets = [0, 0], sizes = [16, 128], strides = [1, 1]} : vector<18x128xf32> to vector<16x128xf32>
    %10 = vector.broadcast %0 : vector<1x128xf32> to vector<16x128xf32>
    %11 = arith.mulf %9, %10 : vector<16x128xf32>
    %12 = vector.extract_strided_slice %8 {offsets = [1, 0], sizes = [16, 128], strides = [1, 1]} : vector<18x128xf32> to vector<16x128xf32>
    %13 = vector.broadcast %1 : vector<1x128xf32> to vector<16x128xf32>
    %14 = arith.mulf %12, %13 : vector<16x128xf32>
    %15 = arith.addf %11, %14 : vector<16x128xf32>
    %16 = vector.extract_strided_slice %8 {offsets = [2, 0], sizes = [16, 128], strides = [1, 1]} : vector<18x128xf32> to vector<16x128xf32>
    %17 = vector.broadcast %2 : vector<1x128xf32> to vector<16x128xf32>
    %18 = arith.mulf %16, %17 : vector<16x128xf32>
    %19 = arith.addf %15, %18 : vector<16x128xf32>
    %cst = arith.constant dense<0xFF800000> : vector<128xf32>
    %20 = vector.multi_reduction <maximumf>, %19, %cst [0] : vector<16x128xf32> to vector<128xf32>
    %21 = vector.shape_cast %20 : vector<128xf32> to vector<1x128xf32>
    %22 = arith.addf %21, %3 : vector<1x128xf32>
    %cst_11 = arith.constant 0.000000e+00 : f32
    %23 = vector.broadcast %cst_11 : f32 to vector<1x128xf32>
    %24 = arith.maximumf %22, %23 : vector<1x128xf32>
    %c0_12 = arith.constant 0 : index
    %c1_13 = arith.constant 1 : index
    %25 = vector.load %arg0[%c0_12, %c1_13] : memref<18x2xf32, #tpu.memory_space<vmem>>, vector<18x1xf32>
    %26 = vector.shape_cast %25 : vector<18x1xf32> to vector<18x1xf32>
    %27 = vector.broadcast %26 : vector<18x1xf32> to vector<18x128xf32>
    %28 = vector.extract_strided_slice %27 {offsets = [0, 0], sizes = [16, 128], strides = [1, 1]} : vector<18x128xf32> to vector<16x128xf32>
    %29 = vector.broadcast %0 : vector<1x128xf32> to vector<16x128xf32>
    %30 = arith.mulf %28, %29 : vector<16x128xf32>
    %31 = vector.extract_strided_slice %27 {offsets = [1, 0], sizes = [16, 128], strides = [1, 1]} : vector<18x128xf32> to vector<16x128xf32>
    %32 = vector.broadcast %1 : vector<1x128xf32> to vector<16x128xf32>
    %33 = arith.mulf %31, %32 : vector<16x128xf32>
    %34 = arith.addf %30, %33 : vector<16x128xf32>
    %35 = vector.extract_strided_slice %27 {offsets = [2, 0], sizes = [16, 128], strides = [1, 1]} : vector<18x128xf32> to vector<16x128xf32>
    %36 = vector.broadcast %2 : vector<1x128xf32> to vector<16x128xf32>
    %37 = arith.mulf %35, %36 : vector<16x128xf32>
    %38 = arith.addf %34, %37 : vector<16x128xf32>
    %cst_14 = arith.constant dense<0xFF800000> : vector<128xf32>
    %39 = vector.multi_reduction <maximumf>, %38, %cst_14 [0] : vector<16x128xf32> to vector<128xf32>
    %40 = vector.shape_cast %39 : vector<128xf32> to vector<1x128xf32>
    %41 = arith.addf %40, %3 : vector<1x128xf32>
    %cst_15 = arith.constant 0.000000e+00 : f32
    %42 = vector.broadcast %cst_15 : f32 to vector<1x128xf32>
    %43 = arith.maximumf %41, %42 : vector<1x128xf32>
    %44 = tpu.concatenate %24, %43 in 0 : vector<1x128xf32>, vector<1x128xf32> -> vector<2x128xf32>
    %cst_16 = arith.constant dense<0.000000e+00> : vector<2x128xf32>
    %45 = tpu.matmul %44, %4, %cst_16 {dimension_numbers = #tpu.dot_dimension_numbers<[1], [0], [0], [1], [0, 0, 1, 1], [], []>} : vector<2x128xf32>, vector<128x128xf32>, vector<2x128xf32> -> vector<2x128xf32>
    %46 = vector.broadcast %5 : vector<1x128xf32> to vector<2x128xf32>
    %47 = arith.addf %45, %46 : vector<2x128xf32>
    %c0_17 = arith.constant 0 : index
    %c0_18 = arith.constant 0 : index
    %48 = vector.load %arg5[%c0_17, %c0_18] : memref<2x128xf32, #tpu.memory_space<vmem>>, vector<2x128xf32>
    tpu.vector_store %arg5[%c0_17, %c0_18], %47 {strides = array<i32>} : memref<2x128xf32, #tpu.memory_space<vmem>>, vector<2x128xf32>,
    return
  }
}

</mosaic_0001>

<bundles_post_ra>
// kernel: cnn_classifier_forward.2
= control target key start
LH: loop header
LB: loop body
LE: loop exit
PB: predicated region body
PF: predicated region fallthrough
CT: control target
= control target key end

     0   :  { %s412_s0 = inlined_call_operand.vmem [shape: f32[3,128], index: 0, kind: input, shape index: {}]   ;;  %s413_s1 = inlined_call_operand.vmem [shape: f32[1,128], index: 1, kind: input, shape index: {}]   ;;  %s414_s2 = inlined_call_operand.hbm [shape: f32[128,128], index: 2, kind: input, shape index: {}]   ;;  %s415_s3 = inlined_call_operand.vmem [shape: f32[1,128], index: 3, kind: input, shape index: {}]   ;;  %s416_s4 = inlined_call_operand.vmem [shape: f32[2,16], index: 4, kind: input, shape index: {}]   ;;  %s417_s5 = inlined_call_operand.<no memory space> [shape: f32[], index: 5, kind: input, shape index: {}]   ;;  %s418_s6 = inlined_call_operand.hbm [shape: f32[2,128], index: 6, kind: output, shape index: {}]  }
   0x1   :  { %v11_v0 = vstv %s417_s5 }
   0x2   :  { %12 = vsyncpa [#allocation8], 0 }
   0x3   :  { %13 = vsyncpa [#allocation9], 0  ;;  %s25_s25 = sshll.u32 %s414_s2, 4  ;;  %s330_s26 = smov [#allocation7]   ;;  %s26_s25 = int_to_ptr.hbm [resolvable:$true] %s25_s25 }
   0x4   :  { %s27_s27 = sshll.u32 %s330_s26, 4  ;;  %s331_s28 = smov 128   ;;  %s28_s27 = int_to_ptr.vmem [resolvable:$true] %s27_s27 }
   0x5   :  { %s332_s29 = smov 8  }
   0x6   :  { %33 = dma.hbm_to_vmem [thread:$0]  %s26_s25, 2048, %s28_s27, [#allocation8], %s331_s28, %s331_s28, %s332_s29  }
   0x7   :  { %326 = dma.done.wait [#allocation8], 2048  }
   0x8   :  { %327 = vsyncadd [#allocation8], 4294965248  ;;  %v44_v1 = vlaneseq  ;;  %v333_v2 = vmov 1   ;;  %v334_v4 = vmov 0   ;;  %vm49_vm1 = vcmask 1046528   ;;  %v263_v5 = vld [vmem:[%s416_s4 + $0x8] sm:$0xff] }
   0x9   :  { %271 = vset.pattern.permute.xlu1 %v333_v2  ;;  %270 = vset.pattern.permute.xlu0 %v333_v2  ;;  %v262_v6 = vld [vmem:[%s416_s4] sm:$0xff]  ;;  %v95_v16 = vld [vmem:[#allocation7 + $0x78] sm:$0xff]  ;;  %v94_v17 = vld [vmem:[#allocation7 + $0x70] sm:$0xff]  ;;  %vm142_vm2 = vcmask 1045504   ;;  %vm217_vm3 = vcmask 1040384   ;;  %s335_s16 = smov [#allocation10]  }
   0xa   :  { %v45_v3 = vand.u32 127, %v44_v1  ;;  %273 = vset.pattern.permute.xlu2 %v334_v4  ;;  %222 = vmatpush.msra.mxu0 %v95_v16  ;;  %v93_v18 = vld [vmem:[#allocation7 + $0x68] sm:$0xff]  ;;  %v92_v19 = vld [vmem:[#allocation7 + $0x60] sm:$0xff]  ;;  %v91_v20 = vld [vmem:[#allocation7 + $0x58] sm:$0xff]  ;;  %s248_s17 = sshll.u32 %s335_s16, 4  ;;  %s250_s19 = sshll.u32 %s418_s6, 4  ;;  %s249_s17 = int_to_ptr.vmem [resolvable:$true] %s248_s17  ;;  %s251_s19 = int_to_ptr.hbm [resolvable:$true] %s250_s19 }
   0xb   :  { %v90_v21 = vld [vmem:[#allocation7 + $0x50] sm:$0xff]  ;;  %v89_v22 = vld [vmem:[#allocation7 + $0x48] sm:$0xff]  ;;  %v88_v24 = vld [vmem:[#allocation7 + $0x40] sm:$0xff] }
   0xc   :  { %vm47_vm0 = vcmp.lt.s32.totalorder %v45_v3, 2  ;;  %223 = vmatpush.msra.mxu0 %v94_v17  ;;  %v87_v25 = vld [vmem:[#allocation7 + $0x38] sm:$0xff]  ;;  %v86_v26 = vld [vmem:[#allocation7 + $0x30] sm:$0xff]  ;;  %v275_v28 = vld [vmem:[%s412_s0 + $0x1] ss:$0 sm:$0xff] }
   0xd   :  { %v61_v7 = vsel %vm47_vm0, %v263_v5, %v11_v0  ;;  %v48_v8 = vsel %vm47_vm0, %v262_v6, %v11_v0  ;;  %v85_v29 = vld [vmem:[#allocation7 + $0x28] sm:$0xff]  ;;  %v276_v30 = vld [vmem:[%s412_s0 + $0x2] ss:$0 sm:$0xff]  ;;  %v83_v33 = vld [vmem:[#allocation7 + $0x18] sm:$0xff] }
   0xe   :  { %v70_v9 = vsel %vm49_vm1, %v11_v0, %v61_v7  ;;  %v50_v10 = vsel %vm49_vm1, %v48_v8, %v11_v0  ;;  %v63_v11 = vsel %vm49_vm1, %v61_v7, %v48_v8  ;;  %224 = vmatpush.msra.mxu0 %v93_v18  ;;  %v84_v31 = vld [vmem:[#allocation7 + $0x20] sm:$0xff]  ;;  %v82_v36 = vld [vmem:[#allocation7 + $0x10] sm:$0xff]  ;;  %v81_v44 = vld [vmem:[#allocation7 + $0x8] sm:$0xff] }
   0xf   :  { %v71_v12 = vrot.slane %v70_v9, 7  ;;  %v51_v13 = vrot.slane %v50_v10, 7  ;;  %v64_v14 = vrot.slane %v63_v11, 7  ;;  %v274_v37 = vld [vmem:[%s412_s0] ss:$0 sm:$0xff] }
  0x10   :  { %225 = vmatpush.msra.mxu0 %v92_v19  ;;  %v80_v52 = vld [vmem:[#allocation7] sm:$0xff] }
  0x11   :  { %75 = vst [vmem:[#allocation11 + $0x8] sm:$0xff] %v71_v12  ;;  %162 = vperm.xlu0 %270, %v51_v13   ;;  %107 = vperm.xlu2 %273, %v64_v14  }
  0x12   :  { %226 = vmatpush.msra.mxu0 %v91_v20 }
  0x14   :  { %227 = vmatpush.msra.mxu0 %v90_v21 }
  0x16   :  { %228 = vmatpush.msra.mxu0 %v89_v22 }
  0x18   :  { %v99_v15 = vld [vmem:[#allocation11 + $0x8] sm:$0x3]  ;;  %229 = vmatpush.msra.mxu0 %v88_v24 }
  0x19   :  { %172 = vperm.xlu1 %271, %v99_v15   ;;  %166 = vperm.xlu0 %270, %v64_v14  }
  0x1a   :  { %115 = vperm.xlu2 %273, %v99_v15   ;;  %230 = vmatpush.msra.mxu0 %v87_v25 }
  0x1c   :  { %231 = vmatpush.msra.mxu0 %v86_v26 }
  0x1e   :  { %232 = vmatpush.msra.mxu0 %v85_v29 }
  0x20   :  { %233 = vmatpush.msra.mxu0 %v84_v31  ;;  %v79_v31 = vld [vmem:[%s413_s1] sm:$0x1] }
  0x21   :  { %272 = vset.pattern.permute.xlu1 %v334_v4 }
  0x22   :  { %102 = vperm.xlu1 %272, %v51_v13   ;;  %234 = vmatpush.msra.mxu0 %v83_v33 }
  0x24   :  { %235 = vmatpush.msra.mxu0 %v82_v36 }
  0x26   :  { %236 = vmatpush.msra.mxu0 %v81_v44 }
  0x28   :  { %237 = vmatpush.msra.mxu0 %v80_v52 }
  0x6b   :  { %v108_v23 = vpop.permute.xlu2 %107 }
  0x6c   :  { %v120_v45 = vmul.f32 %v275_v28, %v108_v23  ;;  %v137_v56 = vmul.f32 %v276_v30, %v108_v23  ;;  %v112_v4 = vmul.f32 %v274_v37, %v108_v23 }
  0x6e   :  { %v127_v60 = vrot.slane %v120_v45, 1  ;;  %v144_v5 = vrot.slane %v137_v56, 2 }
  0x74   :  { %v116_v34 = vpop.permute.xlu2 %115 }
  0x75   :  { %v121_v46 = vmul.f32 %v275_v28, %v116_v34  ;;  %v138_v57 = vmul.f32 %v276_v30, %v116_v34 }
  0x77   :  { %v129_v61 = vrot.slane %v121_v46, 1  ;;  %v146_v6 = vrot.slane %v138_v57, 2 }
  0x79   :  { %v130_v8 = vsel %vm49_vm1, %v127_v60, %v129_v61  ;;  %v147_v17 = vsel %vm142_vm2, %v144_v5, %v146_v6 }
  0x7a   :  { %v134_v15 = vadd.f32 %v130_v8, %v112_v4 }
  0x7c   :  { %v151_v23 = vadd.f32 %v147_v17, %v134_v15 }
  0x83   :  { %v163_v27 = vpop.permute.xlu0 %162 }
  0x84   :  { %v175_v32 = vmul.f32 %v275_v28, %v163_v27  ;;  %v190_v35 = vmul.f32 %v276_v30, %v163_v27  ;;  %v169_v53 = vmul.f32 %v274_v37, %v163_v27 }
  0x86   :  { %v181_v40 = vrot.slane %v175_v32, 1  ;;  %v196_v48 = vrot.slane %v190_v35, 2 }
  0x8b   :  { %v173_v38 = vpop.permute.xlu1 %172  ;;  %v167_v39 = vpop.permute.xlu0 %166 }
  0x8c   :  { %v177_v41 = vmul.f32 %v275_v28, %v173_v38  ;;  %v192_v42 = vmul.f32 %v276_v30, %v173_v38  ;;  %v176_v43 = vmul.f32 %v275_v28, %v167_v39  ;;  %v191_v47 = vmul.f32 %v276_v30, %v167_v39 }
  0x8d   :  { %v170_v54 = vmul.f32 %v274_v37, %v167_v39 }
  0x8e   :  { %v184_v49 = vrot.slane %v177_v41, 1  ;;  %v199_v50 = vrot.slane %v192_v42, 2  ;;  %v182_v51 = vrot.slane %v176_v43, 1  ;;  %v197_v55 = vrot.slane %v191_v47, 2  ;;  %v277_v42 = vld [vmem:[%s415_s3] ss:$0 sm:$0xff] }
  0x90   :  { %v183_v58 = vsel %vm49_vm1, %v181_v40, %v182_v51  ;;  %v185_v59 = vsel %vm49_vm1, %v182_v51, %v184_v49  ;;  %v198_v0 = vsel %vm142_vm2, %v196_v48, %v197_v55  ;;  %v200_v1 = vsel %vm142_vm2, %v197_v55, %v199_v50 }
  0x91   :  { %v188_v62 = vadd.f32 %v183_v58, %v169_v53  ;;  %v189_v63 = vadd.f32 %v185_v59, %v170_v54 }
  0x93   :  { %v203_v2 = vadd.f32 %v198_v0, %v188_v62  ;;  %v204_v3 = vadd.f32 %v200_v1, %v189_v63 }
  0x94   :  { %v103_v7 = vpop.permute.xlu1 %102 }
  0x95   :  { %v205_v9 = vmax.f32 %v203_v2, %v204_v3  ;;  %v119_v10 = vmul.f32 %v275_v28, %v103_v7  ;;  %v136_v11 = vmul.f32 %v276_v30, %v103_v7  ;;  %v111_v16 = vmul.f32 %v274_v37, %v103_v7 }
  0x97   :  { %v206_v12 = vrot.slane %v205_v9, 4  ;;  %v126_v13 = vrot.slane %v119_v10, 1  ;;  %v143_v14 = vrot.slane %v136_v11, 2 }
  0x99   :  { %v207_v18 = vmax.f32 %v205_v9, %v206_v12  ;;  %v128_v19 = vsel %vm49_vm1, %v126_v13, %v127_v60  ;;  %v145_v22 = vsel %vm142_vm2, %v143_v14, %v144_v5 }
  0x9a   :  { %v133_v20 = vadd.f32 %v128_v19, %v111_v16 }
  0x9b   :  { %v208_v21 = vrot.slane %v207_v18, 2 }
  0x9c   :  { %v150_v24 = vadd.f32 %v145_v22, %v133_v20 }
  0x9d   :  { %v209_v25 = vmax.f32 %v207_v18, %v208_v21 }
  0x9e   :  { %v152_v26 = vmax.f32 %v150_v24, %v151_v23 }
  0x9f   :  { %v210_v27 = vrot.slane %v209_v25, 1 }
  0xa0   :  { %v153_v28 = vrot.slane %v152_v26, 4 }
  0xa1   :  { %v211_v30 = vmax.f32 %v209_v25, %v210_v27 }
  0xa2   :  { %v154_v29 = vmax.f32 %v152_v26, %v153_v28 }
  0xa3   :  { %v212_v34 = vadd.f32 %v211_v30, %v79_v31 }
  0xa4   :  { %v155_v32 = vrot.slane %v154_v29, 2 }
  0xa5   :  { %v213_v37 = vmax.f32 %v212_v34, 0.0 }
  0xa6   :  { %v156_v33 = vmax.f32 %v154_v29, %v155_v32 }
  0xa7   :  { %v215_v40 = vrot.slane %v213_v37, 7 }
  0xa8   :  { %v157_v35 = vrot.slane %v156_v33, 1 }
  0xaa   :  { %v158_v36 = vmax.f32 %v156_v33, %v157_v35 }
  0xac   :  { %v159_v38 = vadd.f32 %v158_v36, %v79_v31 }
  0xae   :  { %v160_v39 = vmax.f32 %v159_v38, 0.0 }
  0xb0   :  { %v218_v41 = vsel %vm217_vm3, %v160_v39, %v215_v40 }
  0xb1   :  { %238 = vmatmul.f32.vlgmr.msra.gmra.mxu0 %v218_v41 }
 0x12e   :  { %v239_v43 = vpop.f32.mrf.mxu0 }
 0x12f   :  { %v240_v44 = vadd.f32 %v277_v42, %v239_v43 }
 0x131   :  { %242 = vst [vmem:[#allocation10] sm:$0x3] %v240_v44 }
 0x132   :  { %253 = dma.vmem_to_hbm [thread:$0]  %s249_s17, 32, %s251_s19, [#allocation9]  }
 0x133   :  { %328 = dma.done.wait [#allocation9], 32  }
 0x134   :  { %329 = vsyncadd [#allocation9], 4294967264 }
 0x135   :  { %258 = vsyncpa [#allocation8], 1 }
 0x136   :  { %259 = vsyncpa [#allocation9], 1 }

</bundles_post_ra>
